<compile_context>
chip_gen: v5e
topology: v5e:2x2
jax: 0.10.0
libtpu: 0.0.40
codegen_flags: <defaults>
</compile_context>

<pallas_src>
import jax
import jax.numpy as jnp
from jax.experimental import pallas as pl
from jax.experimental.pallas import tpu as pltpu


def _round_up(x, m):
    return -(-x // m) * m


def _split_dim(dim, max_tile, align):
    """Return (padded_dim, tile): tile is a multiple of `align`, tile divides
    padded_dim, padding beyond the `align` requirement is minimized."""
    dim = _round_up(dim, align)
    max_tile = max(align, (max_tile // align) * align)
    if dim <= max_tile:
        return dim, dim
    nblocks = -(-dim // max_tile)                     # cdiv
    tile = _round_up(-(-dim // nblocks), align)       # minimal aligned tile
    return tile * nblocks, tile


def _encoder_kernel(x_ref, wt_ref, b_ref, o_ref, acc_ref):
    # x_ref: (tm, tk), wt_ref: (tk, tn) [pre-transposed W], b_ref: (1, tn),
    # o_ref: (tm, tn), acc_ref: (tm, tn) f32 scratch.
    k = pl.program_id(2)

    @pl.when(k == 0)
    def _():
        # Fold the bias into the accumulator init (saves an epilogue add).
        acc_ref[...] = jnp.broadcast_to(
            b_ref[...].astype(jnp.float32), acc_ref.shape)

    # Canonical (M,K) x (K,N) MXU matmul -- no transpose / relayout in-kernel.
    acc_ref[...] += jnp.dot(x_ref[...], wt_ref[...],
                            preferred_element_type=jnp.float32)

    @pl.when(k == pl.num_programs(2) - 1)
    def _():
        o_ref[...] = acc_ref[...].astype(o_ref.dtype)


def prepare_encoder_params(weight, bias, *, compute_dtype=jnp.bfloat16,
                           max_tn=512, max_tk=1024):
    """Pad + transpose + cast the Linear parameters ONCE.

    weight: (dim_out, dim_in) PyTorch layout, bias: (dim_out,).
    compute_dtype=None keeps the original (f32) MXU path.
    """
    dim_out, dim_in = weight.shape
    K, tk = _split_dim(dim_in, max_tk, 128)
    N, tn = _split_dim(dim_out, max_tn, 128)

    wt = weight.T                                   # (dim_in, dim_out) = (K, N)
    if (K, N) != (dim_in, dim_out):
        wt = jnp.pad(wt, ((0, K - dim_in), (0, N - dim_out)))
    if compute_dtype is not None:
        wt = wt.astype(compute_dtype)

    b_p = bias if N == dim_out else jnp.pad(bias, (0, N - dim_out))
    b2d = b_p.reshape(1, N).astype(jnp.float32)

    return dict(wt=wt, b2d=b2d, dim_in=dim_in, dim_out=dim_out,
                K=K, tk=tk, N=N, tn=tn, compute_dtype=compute_dtype)


def encoder_forward(x, params, *, max_tm=512):
    """Linear forward: x @ W.T + b with pre-prepared (padded/cast) params."""
    dim_in, dim_out = params["dim_in"], params["dim_out"]
    wt, b2d = params["wt"], params["b2d"]
    K, tk, N, tn = params["K"], params["tk"], params["N"], params["tn"]
    compute_dtype = params["compute_dtype"]

    orig_shape = x.shape
    assert orig_shape[-1] == dim_in, "x last dim must equal dim_in"
    x2d = x.reshape(-1, dim_in)
    B = x2d.shape[0]

    # Sub-32-bit dtypes pack rows along sublanes: bf16 -> 16-row alignment.
    itemsize = jnp.dtype(compute_dtype if compute_dtype is not None
                         else x.dtype).itemsize
    row_align = max(8, 32 // itemsize)
    M, tm = _split_dim(B, max_tm, row_align)

    x_p = x2d
    if (M, K) != (B, dim_in):
        x_p = jnp.pad(x2d, ((0, M - B), (0, K - dim_in)))
    if compute_dtype is not None:
        x_p = x_p.astype(compute_dtype)

    # v7x megacore: expose >=2 parallel tiles if the problem fit a single block.
    if M // tm == 1 and N // tn == 1 and tn % 256 == 0:
        tn //= 2

    nm, nn, nk = M // tm, N // tn, K // tk
    out_dtype = x.dtype

    flops = 2 * M * N * K
    bytes_accessed = (x_p.size * x_p.dtype.itemsize
                      + wt.size * wt.dtype.itemsize
                      + b2d.size * 4
                      + M * N * jnp.dtype(out_dtype).itemsize)

    out_p = pl.pallas_call(
        _encoder_kernel,
        out_shape=jax.ShapeDtypeStruct((M, N), out_dtype),
        grid=(nm, nn, nk),
        in_specs=[
            pl.BlockSpec((tm, tk), lambda i, j, k: (i, k)),   # x tile
            pl.BlockSpec((tk, tn), lambda i, j, k: (k, j)),   # W^T tile (K, N)
            pl.BlockSpec((1, tn), lambda i, j, k: (0, j)),    # bias, resident over K
        ],
        out_specs=pl.BlockSpec((tm, tn), lambda i, j, k: (i, j)),
        scratch_shapes=[pltpu.VMEM((tm, tn), jnp.float32)],
        compiler_params=pltpu.CompilerParams(
            dimension_semantics=("parallel", "parallel", "arbitrary"),
            vmem_limit_bytes=32 * 1024 * 1024),
        cost_estimate=pl.CostEstimate(flops=flops, transcendentals=0,
                                      bytes_accessed=bytes_accessed),
    )(x_p, wt, b2d)

    out = out_p[:B, :dim_out]
    return out.reshape(*orig_shape[:-1], dim_out)


if __name__ == "__main__":
    # Small shapes consistent with the module: Encoder(dim_in=32, dim_out=64).
    batch, dim_in, dim_out = 8, 32, 64

    key = jax.random.PRNGKey(0)
    kx, kw, kb = jax.random.split(key, 3)

    # nn.Linear params: W (dim_out, dim_in), b (dim_out,).
    bound = 1.0 / (dim_in ** 0.5)
    weight = jax.random.uniform(kw, (dim_out, dim_in), jnp.float32, -bound, bound)
    bias = jax.random.uniform(kb, (dim_out,), jnp.float32, -bound, bound)
    # TODO(synk): `self.biais` / decode() are not part of forward(); not implemented.

    x = jax.random.normal(kx, (batch, dim_in), jnp.float32)

    # --- default bf16 compute path (f32 accumulation, f32 output) ---
    params_bf16 = prepare_encoder_params(weight, bias)          # prepared ONCE
    out = jax.block_until_ready(encoder_forward(x, params_bf16))
    ref_f32 = x @ weight.T + bias
    assert out.shape == (batch, dim_out)
    assert jnp.allclose(out, ref_f32, atol=2e-2, rtol=2e-2), \
        "bf16-path mismatch vs f32 reference"

    # --- full-precision path (compute_dtype=None), tight tolerance ---
    params_f32 = prepare_encoder_params(weight, bias, compute_dtype=None)
    out_f32 = jax.block_until_ready(encoder_forward(x, params_f32))
    assert jnp.allclose(out_f32, ref_f32, atol=1e-5, rtol=1e-5), \
        "f32-path mismatch vs reference"

    print("KERNEL_OK")
</pallas_src>

<mosaic_0001>
module attributes {stable_mosaic.version = 11 : i64} {
  func.func @_encoder_kernel(%arg0: i32, %arg1: i32, %arg2: i32, %arg3: memref<16x128xbf16, #tpu.memory_space<vmem>>, %arg4: memref<128x128xbf16, #tpu.memory_space<vmem>>, %arg5: memref<1x128xf32, #tpu.memory_space<vmem>>, %arg6: memref<16x128xf32, #tpu.memory_space<vmem>>, %arg7: memref<16x128xf32, #tpu.memory_space<vmem>>) attributes {dimension_semantics = [#tpu.dimension_semantics<parallel>, #tpu.dimension_semantics<parallel>, #tpu.dimension_semantics<arbitrary>], iteration_bounds = array<i64: 1, 1, 1>, scalar_prefetch = 0 : i64, scratch_operands = 1 : i64, tpu.core_type = #tpu.core_type<tc>, window_params = [{transform_indices = @transform_0, window_bounds = array<i64: 16, 128>}, {transform_indices = @transform_1, window_bounds = array<i64: 128, 128>}, {transform_indices = @transform_2, window_bounds = array<i64: 1, 128>}, {transform_indices = @transform_3, window_bounds = array<i64: 16, 128>}]} {
    %c0_i32 = arith.constant 0 : i32
    %0 = arith.cmpi eq, %arg2, %c0_i32 : i32
    %1 = arith.extui %0 : i1 to i32
    %c0_i32_0 = arith.constant 0 : i32
    %2 = arith.cmpi ne, %1, %c0_i32_0 : i32
    scf.if %2 {
      %c0_10 = arith.constant 0 : index
      %c0_11 = arith.constant 0 : index
      %12 = vector.load %arg5[%c0_10, %c0_11] : memref<1x128xf32, #tpu.memory_space<vmem>>, vector<1x128xf32>
      %13 = vector.shape_cast %12 : vector<1x128xf32> to vector<1x128xf32>
      %14 = vector.broadcast %13 : vector<1x128xf32> to vector<16x128xf32>
      %c0_12 = arith.constant 0 : index
      %c0_13 = arith.constant 0 : index
      %15 = vector.load %arg7[%c0_12, %c0_13] : memref<16x128xf32, #tpu.memory_space<vmem>>, vector<16x128xf32>
      tpu.vector_store %arg7[%c0_12, %c0_13], %14 {strides = array<i32>} : memref<16x128xf32, #tpu.memory_space<vmem>>, vector<16x128xf32>,
    } else {
    }
    %c0 = arith.constant 0 : index
    %c0_1 = arith.constant 0 : index
    %3 = vector.load %arg7[%c0, %c0_1] : memref<16x128xf32, #tpu.memory_space<vmem>>, vector<16x128xf32>
    %c0_2 = arith.constant 0 : index
    %c0_3 = arith.constant 0 : index
    %4 = vector.load %arg3[%c0_2, %c0_3] : memref<16x128xbf16, #tpu.memory_space<vmem>>, vector<16x128xbf16>
    %c0_4 = arith.constant 0 : index
    %c0_5 = arith.constant 0 : index
    %5 = vector.load %arg4[%c0_4, %c0_5] : memref<128x128xbf16, #tpu.memory_space<vmem>>, vector<128x128xbf16>
    %cst = arith.constant dense<0.000000e+00> : vector<16x128xf32>
    %6 = tpu.matmul %4, %5, %cst {dimension_numbers = #tpu.dot_dimension_numbers<[1], [0], [0], [1], [0, 0, 1, 1], [], []>} : vector<16x128xbf16>, vector<128x128xbf16>, vector<16x128xf32> -> vector<16x128xf32>
    %7 = arith.addf %3, %6 : vector<16x128xf32>
    %c0_6 = arith.constant 0 : index
    %c0_7 = arith.constant 0 : index
    %8 = vector.load %arg7[%c0_6, %c0_7] : memref<16x128xf32, #tpu.memory_space<vmem>>, vector<16x128xf32>
    tpu.vector_store %arg7[%c0_6, %c0_7], %7 {strides = array<i32>} : memref<16x128xf32, #tpu.memory_space<vmem>>, vector<16x128xf32>,
    %c0_i32_8 = arith.constant 0 : i32
    %9 = arith.cmpi eq, %arg2, %c0_i32_8 : i32
    %10 = arith.extui %9 : i1 to i32
    %c0_i32_9 = arith.constant 0 : i32
    %11 = arith.cmpi ne, %10, %c0_i32_9 : i32
    scf.if %11 {
      %c0_10 = arith.constant 0 : index
      %c0_11 = arith.constant 0 : index
      %12 = vector.load %arg7[%c0_10, %c0_11] : memref<16x128xf32, #tpu.memory_space<vmem>>, vector<16x128xf32>
      %c0_12 = arith.constant 0 : index
      %c0_13 = arith.constant 0 : index
      %13 = vector.load %arg6[%c0_12, %c0_13] : memref<16x128xf32, #tpu.memory_space<vmem>>, vector<16x128xf32>
      tpu.vector_store %arg6[%c0_12, %c0_13], %12 {strides = array<i32>} : memref<16x128xf32, #tpu.memory_space<vmem>>, vector<16x128xf32>,
    } else {
    }
    return
  }
  func.func @transform_0(%arg0: i32, %arg1: i32, %arg2: i32) -> (i32, i32) {
    %c0_i32 = arith.constant 0 : i32
    return %arg0, %arg2 : i32, i32
  }
  func.func @transform_1(%arg0: i32, %arg1: i32, %arg2: i32) -> (i32, i32) {
    %c0_i32 = arith.constant 0 : i32
    return %arg2, %arg1 : i32, i32
  }
  func.func @transform_2(%arg0: i32, %arg1: i32, %arg2: i32) -> (i32, i32) {
    %c0_i32 = arith.constant 0 : i32
    %c0_i32_0 = arith.constant 0 : i32
    return %c0_i32, %arg1 : i32, i32
  }
  func.func @transform_3(%arg0: i32, %arg1: i32, %arg2: i32) -> (i32, i32) {
    %c0_i32 = arith.constant 0 : i32
    return %arg0, %arg1 : i32, i32
  }
}

</mosaic_0001>

<bundles_post_ra>
// kernel: tpu_custom_call.1
= control target key start
LH: loop header
LB: loop body
LE: loop exit
PB: predicated region body
PF: predicated region fallthrough
CT: control target
= control target key end

     0   :  { %8 = vsyncpa [#allocation4], 0  ;;  %s346_s0 = inlined_call_operand.hbm [shape: bf16[16,128], index: 0, kind: input, shape index: {}]   ;;  %s347_s1 = inlined_call_operand.hbm [shape: bf16[128,128], index: 1, kind: input, shape index: {}]   ;;  %s348_s2 = inlined_call_operand.vmem [shape: f32[1,128], index: 2, kind: input, shape index: {}]   ;;  %s349_s3 = inlined_call_operand.hbm [shape: f32[16,128], index: 3, kind: output, shape index: {}]  }
   0x1   :  { %9 = vsyncpa [#allocation7], 0 }
   0x2   :  { %10 = vsyncpa [#allocation5], 0  ;;  %s15_s14 = sshll.u32 %s346_s0, 4  ;;  %s307_s15 = smov [#allocation3]   ;;  %s16_s14 = int_to_ptr.hbm [resolvable:$true] %s15_s14 }
   0x3   :  { %s17_s16 = sshll.u32 %s307_s15, 4  ;;  %s28_s19 = sshll.u32 %s347_s1, 4  ;;  %s18_s16 = int_to_ptr.vmem [resolvable:$true] %s17_s16  ;;  %s29_s19 = int_to_ptr.hbm [resolvable:$true] %s28_s19 }
   0x4   :  { %s308_s20 = smov 64   ;;  %s309_s21 = smov 4  }
   0x5   :  { %23 = dma.hbm_to_vmem [thread:$0]  %s16_s14, 128, %s18_s16, [#allocation4], %s308_s20, %s308_s20, %s309_s21  }
   0x6   :  { %s310_s22 = smov [#allocation6]  }
   0x7   :  { %s30_s23 = sshll.u32 %s310_s22, 4  ;;  %s31_s23 = int_to_ptr.vmem [resolvable:$true] %s30_s23 }
   0x8   :  { %36 = dma.hbm_to_vmem [thread:$0]  %s29_s19, 1024, %s31_s23, [#allocation7], %s308_s20, %s308_s20, %s309_s21  }
   0x9   :  { %301 = dma.done.wait [#allocation4], 128  }
   0xa   :  { %302 = vsyncadd [#allocation4], 4294967168 }
   0xb   :  { %303 = dma.done.wait [#allocation7], 1024  }
   0xc   :  { %304 = vsyncadd [#allocation7], 4294966272  ;;  %v220_v0 = vld [vmem:[#allocation6 + $0x38] sm:$0xff]  ;;  %v219_v1 = vld [vmem:[#allocation6 + $0x30] sm:$0xff]  ;;  %s311_s24 = smov [#allocation8]   ;;  %s162_s28 = sshll.u32 %s349_s3, 4  ;;  %s163_s28 = int_to_ptr.hbm [resolvable:$true] %s162_s28 }
   0xd   :  { %131 = vmatpush.bf16.msra.mxu0 %v220_v0  ;;  %v218_v2 = vld [vmem:[#allocation6 + $0x28] sm:$0xff]  ;;  %v217_v3 = vld [vmem:[#allocation6 + $0x20] sm:$0xff]  ;;  %v216_v4 = vld [vmem:[#allocation6 + $0x18] sm:$0xff]  ;;  %s160_s25 = sshll.u32 %s311_s24, 4  ;;  %s312_s29 = smov 128   ;;  %s161_s25 = int_to_ptr.vmem [resolvable:$true] %s160_s25 }
   0xe   :  { %v215_v5 = vld [vmem:[#allocation6 + $0x10] sm:$0xff]  ;;  %v214_v6 = vld [vmem:[#allocation6 + $0x8] sm:$0xff]  ;;  %v213_v7 = vld [vmem:[#allocation6] sm:$0xff]  ;;  %s313_s30 = smov 8  }
   0xf   :  { %v212_v8 = vld [vmem:[#allocation3] sm:$0xff] }
  0x10   :  { %v228_v9 = vld [vmem:[%s348_s2] ss:$0 sm:$0xff] }
  0x11   :  { %132 = vmatpush.bf16.msra.mxu0 %v219_v1 }
  0x15   :  { %133 = vmatpush.bf16.msra.mxu0 %v218_v2 }
  0x19   :  { %134 = vmatpush.bf16.msra.mxu0 %v217_v3 }
  0x1d   :  { %135 = vmatpush.bf16.msra.mxu0 %v216_v4 }
  0x21   :  { %136 = vmatpush.bf16.msra.mxu0 %v215_v5 }
  0x25   :  { %137 = vmatpush.bf16.msra.mxu0 %v214_v6 }
  0x29   :  { %138 = vmatpush.bf16.msra.mxu0 %v213_v7 }
  0x2c   :  { %139 = vmatmul.bf16.vlgmr.msra.gmra.mxu0 %v212_v8 }
  0xa9   :  { %v140_v10 = vpop.f32.mrf.mxu0 }
  0xaa   :  { %v145_v11 = vadd.f32 %v228_v9, %v140_v10 }
  0xac   :  { %154 = vst [vmem:[#allocation8] sm:$0xff] %v145_v11 }
  0xb1   :  { %v142_v12 = vpop.f32.mrf.mxu0 }
  0xb2   :  { %v146_v13 = vadd.f32 %v228_v9, %v142_v12 }
  0xb4   :  { %155 = vst [vmem:[#allocation8 + $0x8] sm:$0xff] %v146_v13 }
  0xb5   :  { %168 = dma.vmem_to_hbm [thread:$0]  %s161_s25, 256, %s163_s28, [#allocation5], %s312_s29, %s312_s29, %s313_s30  }
  0xb6   :  { %305 = dma.done.wait [#allocation5], 256  }
  0xb7   :  { %306 = vsyncadd [#allocation5], 4294967040 }
  0xb8   :  { %173 = vsyncpa [#allocation4], 1 }
  0xb9   :  { %174 = vsyncpa [#allocation7], 1 }
  0xba   :  { %175 = vsyncpa [#allocation5], 1 }

</bundles_post_ra>
